<compile_context>
chip_gen: v7x
topology: tpu7x:2x2x1
jax: 0.10.0
libtpu: 0.0.40
codegen_flags: <defaults>
</compile_context>

<pallas_src>
import jax
import jax.numpy as jnp
from jax.experimental import pallas as pl
from jax.experimental.pallas import tpu as pltpu


# ----------------------------------------------------------------------------
# Parameters per SubModel.__init__ — defined only for faithfulness to the
# module; forward() never reads them, so they are NOT on the hot path.
# ----------------------------------------------------------------------------
def init_params():
    key = jax.random.PRNGKey(0)
    k1, k2, k3, k4 = jax.random.split(key, 4)
    return {
        # nn.Conv2d(2, 2, kernel_size=1, groups=2)
        "conv1_w": jax.random.normal(k1, (2, 1, 1, 1), jnp.float32),
        "conv1_b": jax.random.normal(k2, (2,), jnp.float32),
        # nn.GroupNorm(2, 2)
        "gn_w": jnp.ones((2,), jnp.float32),
        "gn_b": jnp.zeros((2,), jnp.float32),
        # nn.Linear(2, 2)
        "fc_w": jax.random.normal(k3, (2, 2), jnp.float32),
        "fc_b": jax.random.normal(k4, (2,), jnp.float32),
        # nn.Parameter(torch.ones(1))
        "param1": jnp.ones((1,), jnp.float32),
    }


# ----------------------------------------------------------------------------
# Faithful forward: identity, zero cost. This is the recommended hot path.
# ----------------------------------------------------------------------------
def sub_model_forward(x):
    """SubModel.forward(x) == x."""
    return x


# ----------------------------------------------------------------------------
# Optional Pallas identity-copy kernel (debug / structural path only).
# ----------------------------------------------------------------------------
_LANES = 128            # vreg lane width
_SUBLANES = 8           # f32 sublane tiling
_VREG_ELEMS = _LANES * _SUBLANES
_MAX_BLOCK_ROWS = 8192  # (8192, 128) f32 = 4 MiB/block; x2 (in+out) x2
                        # (double buffer) = 16 MiB VMEM.
_MIN_SPLIT_ROWS = 2048  # below ~1 MiB, per-step overhead > benefit of splitting


def _copy_kernel(x_ref, o_ref):
    o_ref[...] = x_ref[...]


def sub_model_forward_pallas(x):
    """Identity implemented as a Pallas copy kernel.

    Kept off the hot path (use `sub_model_forward` there). No padding, no
    trailing slice, no input/output aliasing — traffic stays at 2n bytes.
    """
    n = x.size
    if n == 0:
        return x

    if n % _VREG_ELEMS == 0:
        # Lane-dense path: metadata-only reshape to (rows, 128), rows % 8 == 0,
        # so the copy lowers to unmasked full-vreg vld/vst.
        rows = n // _LANES
        slab = x.reshape(rows, _LANES)

        if rows <= _MIN_SPLIT_ROWS:
            block_rows, grid_rows = rows, 1
        else:
            # At least 2 grid steps (feeds both v7x TCs), blocks <= 4 MiB.
            half_rows = ((pl.cdiv(rows, 2) + _SUBLANES - 1) // _SUBLANES) * _SUBLANES
            block_rows = min(_MAX_BLOCK_ROWS, half_rows)
            grid_rows = pl.cdiv(rows, block_rows)

        out = pl.pallas_call(
            _copy_kernel,
            out_shape=jax.ShapeDtypeStruct((rows, _LANES), x.dtype),
            grid=(grid_rows,),
            in_specs=[pl.BlockSpec((block_rows, _LANES), lambda i: (i, 0))],
            out_specs=pl.BlockSpec((block_rows, _LANES), lambda i: (i, 0)),
            compiler_params=pltpu.CompilerParams(
                dimension_semantics=("parallel",),   # megacore-shard on v7x
                vmem_limit_bytes=48 << 20),
        )(slab)
        return out.reshape(x.shape)

    # Fallback: pass x unreshaped; block_shape == full array dims satisfies the
    # (8,128) rule without any padding or slicing.
    return pl.pallas_call(
        _copy_kernel,
        out_shape=jax.ShapeDtypeStruct(x.shape, x.dtype),
        in_specs=[pl.BlockSpec(x.shape, lambda: (0,) * x.ndim)],
        out_specs=pl.BlockSpec(x.shape, lambda: (0,) * x.ndim),
        compiler_params=pltpu.CompilerParams(vmem_limit_bytes=48 << 20),
    )(x)


if __name__ == "__main__":
    # NCHW input consistent with conv1 expecting 2 input channels.
    key = jax.random.PRNGKey(0)
    x = jax.random.normal(key, (2, 2, 16, 16), jnp.float32)

    # Hot path: identity, no kernel.
    y_fast = sub_model_forward(x)

    # Exercise the Pallas kernel once (opt-in path).
    y_kernel = sub_model_forward_pallas(x)
    y_kernel = jax.block_until_ready(y_kernel)

    assert y_fast.shape == x.shape and y_fast.dtype == x.dtype
    assert y_kernel.shape == x.shape and y_kernel.dtype == x.dtype
    assert bool(jnp.all(y_fast == x))
    assert bool(jnp.all(y_kernel == x))
    print("KERNEL_OK")
</pallas_src>

<mosaic_0001>
module attributes {stable_mosaic.version = 11 : i64} {
  func.func @_copy_kernel(%arg0: i32, %arg1: memref<8x128xf32, #tpu.memory_space<vmem>>, %arg2: memref<8x128xf32, #tpu.memory_space<vmem>>) attributes {dimension_semantics = [#tpu.dimension_semantics<parallel>], iteration_bounds = array<i64: 1>, scalar_prefetch = 0 : i64, scratch_operands = 0 : i64, tpu.core_type = #tpu.core_type<tc>, window_params = [{transform_indices = @transform_0, window_bounds = array<i64: 8, 128>}, {transform_indices = @transform_1, window_bounds = array<i64: 8, 128>}]} {
    %c0 = arith.constant 0 : index
    %c0_0 = arith.constant 0 : index
    %0 = vector.load %arg1[%c0, %c0_0] : memref<8x128xf32, #tpu.memory_space<vmem>>, vector<8x128xf32>
    %c0_1 = arith.constant 0 : index
    %c0_2 = arith.constant 0 : index
    %1 = vector.load %arg2[%c0_1, %c0_2] : memref<8x128xf32, #tpu.memory_space<vmem>>, vector<8x128xf32>
    tpu.vector_store %arg2[%c0_1, %c0_2], %0 {strides = array<i32>} : memref<8x128xf32, #tpu.memory_space<vmem>>, vector<8x128xf32>,
    return
  }
  func.func @transform_0(%arg0: i32) -> (i32, i32) {
    %c0_i32 = arith.constant 0 : i32
    %c0_i32_0 = arith.constant 0 : i32
    return %arg0, %c0_i32 : i32, i32
  }
  func.func @transform_1(%arg0: i32) -> (i32, i32) {
    %c0_i32 = arith.constant 0 : i32
    %c0_i32_0 = arith.constant 0 : i32
    return %arg0, %c0_i32 : i32, i32
  }
}

</mosaic_0001>

<bundles_post_ra>
// kernel: tpu_custom_call.1
= control target key start
LH: loop header
LB: loop body
LE: loop exit
PB: predicated region body
PF: predicated region fallthrough
CT: control target
= control target key end

     0   :  { %6 = vsyncpa [#allocation3], 0  ;;  %s124_s0 = inlined_call_operand.hbm [shape: f32[8,128], index: 0, kind: input, shape index: {}]   ;;  %s125_s1 = inlined_call_operand.hbm [shape: f32[8,128], index: 1, kind: output, shape index: {}]  }
   0x1   :  { %7 = vsyncpa [#allocation4], 0  ;;  %s88_s6 = smov [#allocation2]   ;;  %s40_s10 = scalar_lea.hbm %s124_s0, 128 }
   0x2   :  { %s14_s7 = sshll.u32 %s88_s6, 4  ;;  %p41_p0 = scmp.ne.s32.totalorder %s124_s0, %s40_s10  ;;  %s15_s7 = int_to_ptr.vmem [resolvable:$true] %s14_s7 }
   0x3   :  { %p44_p1 = scmp.lt.u32.totalorder %s40_s10, %s124_s0 }
   0x5   :  { %p46_p2 = pnand %p44_p1, %p41_p0 }
   0x7   :  { %49 = shalt.err (!%p46_p2)
}
   0x8   :  { %s50_s15 = scalar_lea.vmem %s15_s7, 128  ;;  %p55_p4 = scmp.lt.s32.totalorder %s15_s7, %s15_s7 }
   0x9   :  { %p51_p3 = scmp.ne.s32.totalorder %s15_s7, %s50_s15  ;;  %p56_p5 = scmp.lt.s32.totalorder %s50_s15, %s50_s15 }
   0xb   :  { %p57_p6 = por %p56_p5, %p55_p4 }
   0xd   :  { %p58_p7 = pnand %p57_p6, %p51_p3 }
   0xf   :  { %61 = shalt.err (!%p58_p7)
}
  0x10   :  { %17 = dma.hbm_to_vmem [thread:$0]  %s124_s0, 128, %s15_s7, [#allocation3]  }
  0x11   :  { %84 = dma.done.wait [#allocation3], 128  }
  0x12   :  { %85 = vsyncadd [#allocation3], 4294967168  ;;  %s89_s18 = smov [#allocation5]   ;;  %v21_v0 = vld [vmem:[#allocation2] sm:$0xff] }
  0x13   :  { %s29_s19 = sshll.u32 %s89_s18, 4  ;;  %22 = vst [vmem:[#allocation5] sm:$0xff] %v21_v0  ;;  %s30_s19 = int_to_ptr.vmem [resolvable:$true] %s29_s19 }
  0x14   :  { %s62_s20 = scalar_lea.vmem %s30_s19, 128  ;;  %p67_p9 = scmp.lt.s32.totalorder %s30_s19, %s30_s19 }
  0x15   :  { %p63_p8 = scmp.ne.s32.totalorder %s30_s19, %s62_s20  ;;  %p68_p10 = scmp.lt.s32.totalorder %s62_s20, %s62_s20 }
  0x17   :  { %p69_p11 = por %p68_p10, %p67_p9 }
  0x19   :  { %p70_p12 = pnand %p69_p11, %p63_p8 }
  0x1b   :  { %73 = shalt.err (!%p70_p12)
}
  0x1c   :  { %s74_s23 = scalar_lea.hbm %s125_s1, 128 }
  0x1d   :  { %p75_p13 = scmp.ne.s32.totalorder %s125_s1, %s74_s23  ;;  %p78_p0 = scmp.lt.u32.totalorder %s74_s23, %s125_s1 }
  0x1f   :  { %p80_p1 = pnand %p78_p0, %p75_p13 }
  0x21   :  { %83 = shalt.err (!%p80_p1)
}
  0x22   :  { %32 = dma.vmem_to_hbm [thread:$0]  %s30_s19, 128, %s125_s1, [#allocation4]  }
  0x23   :  { %86 = dma.done.wait [#allocation4], 128  }
  0x24   :  { %87 = vsyncadd [#allocation4], 4294967168 }
  0x25   :  { %36 = vsyncpa [#allocation3], 1 }
  0x26   :  { %37 = vsyncpa [#allocation4], 1 }

</bundles_post_ra>
